<compile_context>
chip_gen: v5e
topology: v5e:2x2
jax: 0.10.0
libtpu: 0.0.40
codegen_flags: <defaults>
</compile_context>

<pallas_src>
import math

import jax
import jax.numpy as jnp
import numpy as np
from jax import lax
from jax.experimental import pallas as pl
from jax.experimental.pallas import tpu as pltpu

_EPS = 1e-5


def _round_up(x, m):
    return ((x + m - 1) // m) * m


# ----------------------------- in-kernel helpers ----------------------------- #

def _conv_k3_stacked(x, w, ml, mr):
    """Conv1d(k=3, p=1) as one stacked MXU matmul.

    x : (Cin, T)       input tile (channels x columns)
    w : (Cout, 3*Cin)  stacked tap weights [W_left | W_center | W_right]
    ml: (1, T)         1.0 where a left neighbor exists inside the segment
    mr: (1, T)         1.0 where a right neighbor exists inside the segment
    """
    T = x.shape[1]
    x_m1 = pltpu.roll(x, shift=1, axis=1) * ml        # x[..., l-1], zero at segment start
    x_p1 = pltpu.roll(x, shift=T - 1, axis=1) * mr    # x[..., l+1], zero at segment end
    xs = jnp.concatenate([x_m1, x, x_p1], axis=0)     # (3*Cin, T)
    return jnp.dot(w, xs, preferred_element_type=jnp.float32)


# --------------------------------- kernels ----------------------------------- #

def _conv1_stats_kernel(masks_ref, x_ref, w_ref, y_ref, s_ref, q_ref):
    @pl.when(pl.program_id(0) == 0)
    def _():
        s_ref[...] = jnp.zeros_like(s_ref)
        q_ref[...] = jnp.zeros_like(q_ref)

    ml = masks_ref[0:1, :]
    mr = masks_ref[1:2, :]
    y = _conv_k3_stacked(x_ref[...], w_ref[...], ml, mr)
    y_ref[...] = y
    s_ref[...] += jnp.sum(y, axis=1, keepdims=True)
    q_ref[...] += jnp.sum(y * y, axis=1, keepdims=True)


def _bn_relu_conv2_stats_kernel(masks_ref, y1_ref, sc_ref, sh_ref, w_ref,
                                y2_ref, s_ref, q_ref):
    @pl.when(pl.program_id(0) == 0)
    def _():
        s_ref[...] = jnp.zeros_like(s_ref)
        q_ref[...] = jnp.zeros_like(q_ref)

    ml = masks_ref[0:1, :]
    mr = masks_ref[1:2, :]
    mv = masks_ref[2:3, :]   # column validity (zero out padded columns before stats)
    h = jnp.maximum(sc_ref[...] * y1_ref[...] + sh_ref[...], 0.0) * mv
    y = _conv_k3_stacked(h, w_ref[...], ml, mr)
    y2_ref[...] = y
    s_ref[...] += jnp.sum(y, axis=1, keepdims=True)
    q_ref[...] += jnp.sum(y * y, axis=1, keepdims=True)


def _bn_relu_kernel(y2_ref, sc_ref, sh_ref, o_ref):
    o_ref[...] = jnp.maximum(sc_ref[...] * y2_ref[...] + sh_ref[...], 0.0)


# --------------------------------- wrapper ------------------------------------ #

def _bn_affine(ssum, ssq, gamma, beta, count, eps=_EPS):
    """Fold training-mode BatchNorm into per-channel (scale, shift)."""
    mu = ssum / count
    var = jnp.maximum(ssq / count - mu * mu, 0.0)
    scale = gamma * lax.rsqrt(var + eps)
    shift = beta - mu * scale
    return scale, shift


def inconv_forward(x, params, *, target_tile_cols=2048):
    """x: (N, C_in, L) float32 -> (N, C_out, L) float32."""
    w1, b1, g1, be1, w2, b2, g2, be2 = params
    del b1, b2  # per-channel bias before training-mode BN is cancelled by the mean
    N, C_in, L = x.shape
    C_out = w1.shape[0]

    # ---- layout / padding ----
    Cin_p = _round_up(max(C_in, 8), 8)
    Cout_p = _round_up(max(C_out, 8), 8)

    # tile granule: a multiple of L (segment aligned) and of 128 (lane dense)
    granule = (128 // math.gcd(L, 128)) * L
    total_cols = N * L
    n_gran = -(-total_cols // granule)
    gran_per_tile = max(1, min(n_gran, max(1, target_tile_cols // granule)))
    tile_cols = gran_per_tile * granule
    n_tiles = -(-n_gran // gran_per_tile)
    NLp = n_tiles * tile_cols

    # x: (N, Cin, L) -> (Cin_p, NLp), zero padded
    x2d = jnp.transpose(x, (1, 0, 2)).reshape(C_in, total_cols)
    x2d = jnp.pad(x2d, ((0, Cin_p - C_in), (0, NLp - total_cols)))

    # stacked tap weights: (O, I, 3) -> (Cout_p, 3*Cin_p) = [W[...,0] | W[...,1] | W[...,2]]
    def stack_w(w, o_p, i_p):
        wp = jnp.pad(w, ((0, o_p - w.shape[0]), (0, i_p - w.shape[1]), (0, 0)))
        return jnp.concatenate([wp[:, :, 0], wp[:, :, 1], wp[:, :, 2]], axis=1)

    w1s = stack_w(w1, Cout_p, Cin_p)    # (Cout_p, 3*Cin_p)
    w2s = stack_w(w2, Cout_p, Cout_p)   # (Cout_p, 3*Cout_p)

    col = lambda v: jnp.pad(v, (0, Cout_p - v.shape[0])).reshape(Cout_p, 1)
    g1c, be1c, g2c, be2c = col(g1), col(be1), col(g2), col(be2)

    # boundary / validity masks, shared by both conv layers (computed once)
    idx = jnp.arange(NLp, dtype=jnp.int32)
    pos = idx % L
    masks = jnp.stack([(pos >= 1).astype(jnp.float32),
                       (pos <= L - 2).astype(jnp.float32),
                       (idx < total_cols).astype(jnp.float32)], axis=0)  # (3, NLp)

    # ---- specs ----
    slab = lambda rows: pl.BlockSpec((rows, tile_cols), lambda i: (0, i))
    whole = lambda a: pl.BlockSpec(a.shape, lambda i: (0, 0))
    stat_spec = pl.BlockSpec((Cout_p, 1), lambda i: (0, 0))

    # rough per-tile VMEM footprint (double buffering + stacked temps), with headroom
    bytes_per_col = 4 * (2 * Cin_p + 4 * Cout_p + 3 * (Cin_p + Cout_p) + 2 * 3)
    vmem_est = tile_cols * bytes_per_col + 8 * Cout_p * 3 * max(Cin_p, Cout_p)
    vmem_limit = int(min(max(4 * vmem_est, 32 << 20), 48 << 20))
    cparams = lambda sem: pltpu.CompilerParams(
        dimension_semantics=(sem,), vmem_limit_bytes=vmem_limit)

    stat_shape = jax.ShapeDtypeStruct((Cout_p, 1), jnp.float32)
    slab_shape = jax.ShapeDtypeStruct((Cout_p, NLp), jnp.float32)

    # ---- stage 1: conv1 + batch statistics ----
    y1, s1, q1 = pl.pallas_call(
        _conv1_stats_kernel,
        grid=(n_tiles,),
        in_specs=[slab(3), slab(Cin_p), whole(w1s)],
        out_specs=[slab(Cout_p), stat_spec, stat_spec],
        out_shape=[slab_shape, stat_shape, stat_shape],
        compiler_params=cparams("arbitrary"),
    )(masks, x2d, w1s)

    sc1, sh1 = _bn_affine(s1, q1, g1c, be1c, total_cols)

    # ---- stage 2: BN1 + ReLU + conv2 + batch statistics ----
    y2, s2, q2 = pl.pallas_call(
        _bn_relu_conv2_stats_kernel,
        grid=(n_tiles,),
        in_specs=[slab(3), slab(Cout_p), whole(sc1), whole(sh1), whole(w2s)],
        out_specs=[slab(Cout_p), stat_spec, stat_spec],
        out_shape=[slab_shape, stat_shape, stat_shape],
        compiler_params=cparams("arbitrary"),
    )(masks, y1, sc1, sh1, w2s)

    sc2, sh2 = _bn_affine(s2, q2, g2c, be2c, total_cols)

    # ---- stage 3: BN2 + ReLU ----
    out2d = pl.pallas_call(
        _bn_relu_kernel,
        grid=(n_tiles,),
        in_specs=[slab(Cout_p), whole(sc2), whole(sh2)],
        out_specs=slab(Cout_p),
        out_shape=slab_shape,
        compiler_params=cparams("parallel"),
    )(y2, sc2, sh2)

    out2d = out2d[:C_out, :total_cols]
    return jnp.transpose(out2d.reshape(C_out, N, L), (1, 0, 2))


# -------------------------------- reference ----------------------------------- #

def inconv_reference(x, params):
    """Pure-JAX reference of the PyTorch forward (training-mode BN)."""
    w1, b1, g1, be1, w2, b2, g2, be2 = params

    def conv(x, w, b):
        y = lax.conv_general_dilated(x, w, window_strides=(1,), padding=[(1, 1)],
                                     dimension_numbers=("NCH", "OIH", "NCH"))
        return y + b[None, :, None]

    def bn_relu(y, g, be, eps=_EPS):
        mu = jnp.mean(y, axis=(0, 2), keepdims=True)
        var = jnp.mean((y - mu) ** 2, axis=(0, 2), keepdims=True)
        yh = (y - mu) / jnp.sqrt(var + eps)
        return jnp.maximum(g[None, :, None] * yh + be[None, :, None], 0.0)

    y = bn_relu(conv(x, w1, b1), g1, be1)
    y = bn_relu(conv(y, w2, b2), g2, be2)
    return y


def init_params(key, in_ch, out_ch):
    k1, k2, k3, k4 = jax.random.split(key, 4)
    s1 = 1.0 / np.sqrt(in_ch * 3)
    s2 = 1.0 / np.sqrt(out_ch * 3)
    w1 = jax.random.uniform(k1, (out_ch, in_ch, 3), jnp.float32, -s1, s1)
    b1 = jax.random.uniform(k2, (out_ch,), jnp.float32, -s1, s1)
    w2 = jax.random.uniform(k3, (out_ch, out_ch, 3), jnp.float32, -s2, s2)
    b2 = jax.random.uniform(k4, (out_ch,), jnp.float32, -s2, s2)
    g1 = jnp.ones((out_ch,), jnp.float32)
    be1 = jnp.zeros((out_ch,), jnp.float32)
    g2 = jnp.ones((out_ch,), jnp.float32)
    be2 = jnp.zeros((out_ch,), jnp.float32)
    return (w1, b1, g1, be1, w2, b2, g2, be2)


if __name__ == "__main__":
    key = jax.random.PRNGKey(0)
    kx, kp = jax.random.split(key)

    N, in_ch, out_ch, L = 2, 4, 8, 16
    x = jax.random.normal(kx, (N, in_ch, L), jnp.float32)
    params = init_params(kp, in_ch, out_ch)

    fwd = jax.jit(inconv_forward)
    out = fwd(x, params)
    out = jax.block_until_ready(out)

    ref = inconv_reference(x, params)
    np.testing.assert_allclose(np.asarray(out), np.asarray(ref), rtol=1e-4, atol=1e-4)
    assert out.shape == (N, out_ch, L)

    print("KERNEL_OK")
</pallas_src>

<mosaic_0001>
module attributes {stable_mosaic.version = 11 : i64} {
  func.func @_conv1_stats_kernel(%arg0: i32, %arg1: memref<3x128xf32, #tpu.memory_space<vmem>>, %arg2: memref<8x128xf32, #tpu.memory_space<vmem>>, %arg3: memref<8x24xf32, #tpu.memory_space<vmem>>, %arg4: memref<8x128xf32, #tpu.memory_space<vmem>>, %arg5: memref<8x1xf32, #tpu.memory_space<vmem>>, %arg6: memref<8x1xf32, #tpu.memory_space<vmem>>) attributes {dimension_semantics = [#tpu.dimension_semantics<arbitrary>], iteration_bounds = array<i64: 1>, scalar_prefetch = 0 : i64, scratch_operands = 0 : i64, tpu.core_type = #tpu.core_type<tc>, window_params = [{transform_indices = @transform_0, window_bounds = array<i64: 3, 128>}, {transform_indices = @transform_1, window_bounds = array<i64: 8, 128>}, {pipeline_mode = #tpu.pipeline_mode<synchronous>, transform_indices = @transform_2, window_bounds = array<i64: 8, 24>}, {transform_indices = @transform_3, window_bounds = array<i64: 8, 128>}, {pipeline_mode = #tpu.pipeline_mode<synchronous>, transform_indices = @transform_4, window_bounds = array<i64: 8, 1>}, {pipeline_mode = #tpu.pipeline_mode<synchronous>, transform_indices = @transform_5, window_bounds = array<i64: 8, 1>}]} {
    %c0_i32 = arith.constant 0 : i32
    %0 = arith.cmpi eq, %arg0, %c0_i32 : i32
    %1 = arith.extui %0 : i1 to i32
    %c0_i32_0 = arith.constant 0 : i32
    %2 = arith.cmpi ne, %1, %c0_i32_0 : i32
    scf.if %2 {
      %cst_19 = arith.constant 0.000000e+00 : f32
      %27 = vector.broadcast %cst_19 : f32 to vector<8x1xf32>
      %c0_20 = arith.constant 0 : index
      %c0_21 = arith.constant 0 : index
      %28 = vector.load %arg5[%c0_20, %c0_21] : memref<8x1xf32, #tpu.memory_space<vmem>>, vector<8x1xf32>
      tpu.vector_store %arg5[%c0_20, %c0_21], %27 {strides = array<i32>} : memref<8x1xf32, #tpu.memory_space<vmem>>, vector<8x1xf32>,
      %cst_22 = arith.constant 0.000000e+00 : f32
      %29 = vector.broadcast %cst_22 : f32 to vector<8x1xf32>
      %c0_23 = arith.constant 0 : index
      %c0_24 = arith.constant 0 : index
      %30 = vector.load %arg6[%c0_23, %c0_24] : memref<8x1xf32, #tpu.memory_space<vmem>>, vector<8x1xf32>
      tpu.vector_store %arg6[%c0_23, %c0_24], %29 {strides = array<i32>} : memref<8x1xf32, #tpu.memory_space<vmem>>, vector<8x1xf32>,
    } else {
    }
    %c0 = arith.constant 0 : index
    %c0_1 = arith.constant 0 : index
    %3 = vector.load %arg1[%c0, %c0_1] : memref<3x128xf32, #tpu.memory_space<vmem>>, vector<1x128xf32>
    %c1 = arith.constant 1 : index
    %c0_2 = arith.constant 0 : index
    %4 = vector.load %arg1[%c1, %c0_2] : memref<3x128xf32, #tpu.memory_space<vmem>>, vector<1x128xf32>
    %c0_3 = arith.constant 0 : index
    %c0_4 = arith.constant 0 : index
    %5 = vector.load %arg2[%c0_3, %c0_4] : memref<8x128xf32, #tpu.memory_space<vmem>>, vector<8x128xf32>
    %c0_5 = arith.constant 0 : index
    %c0_6 = arith.constant 0 : index
    %6 = vector.load %arg3[%c0_5, %c0_6] : memref<8x24xf32, #tpu.memory_space<vmem>>, vector<8x24xf32>
    %c1_i32 = arith.constant 1 : i32
    %7 = tpu.dynamic_rotate %5 by %c1_i32 dim 1 : vector<8x128xf32>, i32 -> vector<8x128xf32>
    %8 = vector.broadcast %3 : vector<1x128xf32> to vector<8x128xf32>
    %9 = arith.mulf %7, %8 : vector<8x128xf32>
    %c127_i32 = arith.constant 127 : i32
    %10 = tpu.dynamic_rotate %5 by %c127_i32 dim 1 : vector<8x128xf32>, i32 -> vector<8x128xf32>
    %11 = vector.broadcast %4 : vector<1x128xf32> to vector<8x128xf32>
    %12 = arith.mulf %10, %11 : vector<8x128xf32>
    %13 = tpu.concatenate %9, %5, %12 in 0 : vector<8x128xf32>, vector<8x128xf32>, vector<8x128xf32> -> vector<24x128xf32>
    %cst = arith.constant dense<0.000000e+00> : vector<8x128xf32>
    %14 = tpu.matmul %6, %13, %cst {dimension_numbers = #tpu.dot_dimension_numbers<[1], [0], [0], [1], [0, 0, 1, 1], [], []>} : vector<8x24xf32>, vector<24x128xf32>, vector<8x128xf32> -> vector<8x128xf32>
    %c0_7 = arith.constant 0 : index
    %c0_8 = arith.constant 0 : index
    %15 = vector.load %arg4[%c0_7, %c0_8] : memref<8x128xf32, #tpu.memory_space<vmem>>, vector<8x128xf32>
    tpu.vector_store %arg4[%c0_7, %c0_8], %14 {strides = array<i32>} : memref<8x128xf32, #tpu.memory_space<vmem>>, vector<8x128xf32>,
    %c0_9 = arith.constant 0 : index
    %c0_10 = arith.constant 0 : index
    %16 = vector.load %arg5[%c0_9, %c0_10] : memref<8x1xf32, #tpu.memory_space<vmem>>, vector<8x1xf32>
    %cst_11 = arith.constant dense<0.000000e+00> : vector<8xf32>
    %17 = vector.multi_reduction <add>, %14, %cst_11 [1] : vector<8x128xf32> to vector<8xf32>
    %18 = vector.shape_cast %17 : vector<8xf32> to vector<8x1xf32>
    %19 = arith.addf %16, %18 : vector<8x1xf32>
    %c0_12 = arith.constant 0 : index
    %c0_13 = arith.constant 0 : index
    %20 = vector.load %arg5[%c0_12, %c0_13] : memref<8x1xf32, #tpu.memory_space<vmem>>, vector<8x1xf32>
    tpu.vector_store %arg5[%c0_12, %c0_13], %19 {strides = array<i32>} : memref<8x1xf32, #tpu.memory_space<vmem>>, vector<8x1xf32>,
    %c0_14 = arith.constant 0 : index
    %c0_15 = arith.constant 0 : index
    %21 = vector.load %arg6[%c0_14, %c0_15] : memref<8x1xf32, #tpu.memory_space<vmem>>, vector<8x1xf32>
    %22 = arith.mulf %14, %14 : vector<8x128xf32>
    %cst_16 = arith.constant dense<0.000000e+00> : vector<8xf32>
    %23 = vector.multi_reduction <add>, %22, %cst_16 [1] : vector<8x128xf32> to vector<8xf32>
    %24 = vector.shape_cast %23 : vector<8xf32> to vector<8x1xf32>
    %25 = arith.addf %21, %24 : vector<8x1xf32>
    %c0_17 = arith.constant 0 : index
    %c0_18 = arith.constant 0 : index
    %26 = vector.load %arg6[%c0_17, %c0_18] : memref<8x1xf32, #tpu.memory_space<vmem>>, vector<8x1xf32>
    tpu.vector_store %arg6[%c0_17, %c0_18], %25 {strides = array<i32>} : memref<8x1xf32, #tpu.memory_space<vmem>>, vector<8x1xf32>,
    return
  }
  func.func @transform_0(%arg0: i32) -> (i32, i32) {
    %c0_i32 = arith.constant 0 : i32
    %c0_i32_0 = arith.constant 0 : i32
    return %c0_i32, %arg0 : i32, i32
  }
  func.func @transform_1(%arg0: i32) -> (i32, i32) {
    %c0_i32 = arith.constant 0 : i32
    %c0_i32_0 = arith.constant 0 : i32
    return %c0_i32, %arg0 : i32, i32
  }
  func.func @transform_2(%arg0: i32) -> (i32, i32) {
    %c0_i32 = arith.constant 0 : i32
    %c0_i32_0 = arith.constant 0 : i32
    %c0_i32_1 = arith.constant 0 : i32
    return %c0_i32, %c0_i32_0 : i32, i32
  }
  func.func @transform_3(%arg0: i32) -> (i32, i32) {
    %c0_i32 = arith.constant 0 : i32
    %c0_i32_0 = arith.constant 0 : i32
    return %c0_i32, %arg0 : i32, i32
  }
  func.func @transform_4(%arg0: i32) -> (i32, i32) {
    %c0_i32 = arith.constant 0 : i32
    %c0_i32_0 = arith.constant 0 : i32
    %c0_i32_1 = arith.constant 0 : i32
    return %c0_i32, %c0_i32_0 : i32, i32
  }
  func.func @transform_5(%arg0: i32) -> (i32, i32) {
    %c0_i32 = arith.constant 0 : i32
    %c0_i32_0 = arith.constant 0 : i32
    %c0_i32_1 = arith.constant 0 : i32
    return %c0_i32, %c0_i32_0 : i32, i32
  }
}

module attributes {stable_mosaic.version = 11 : i64} {
  func.func @_bn_relu_kernel(%arg0: i32, %arg1: memref<8x128xf32, #tpu.memory_space<vmem>>, %arg2: memref<8x1xf32, #tpu.memory_space<vmem>>, %arg3: memref<8x1xf32, #tpu.memory_space<vmem>>, %arg4: memref<8x128xf32, #tpu.memory_space<vmem>>) attributes {dimension_semantics = [#tpu.dimension_semantics<parallel>], iteration_bounds = array<i64: 1>, scalar_prefetch = 0 : i64, scratch_operands = 0 : i64, tpu.core_type = #tpu.core_type<tc>, window_params = [{transform_indices = @transform_0, window_bounds = array<i64: 8, 128>}, {pipeline_mode = #tpu.pipeline_mode<synchronous>, transform_indices = @transform_1, window_bounds = array<i64: 8, 1>}, {pipeline_mode = #tpu.pipeline_mode<synchronous>, transform_indices = @transform_2, window_bounds = array<i64: 8, 1>}, {transform_indices = @transform_3, window_bounds = array<i64: 8, 128>}]} {
    %c0 = arith.constant 0 : index
    %c0_0 = arith.constant 0 : index
    %0 = vector.load %arg2[%c0, %c0_0] : memref<8x1xf32, #tpu.memory_space<vmem>>, vector<8x1xf32>
    %c0_1 = arith.constant 0 : index
    %c0_2 = arith.constant 0 : index
    %1 = vector.load %arg1[%c0_1, %c0_2] : memref<8x128xf32, #tpu.memory_space<vmem>>, vector<8x128xf32>
    %2 = vector.broadcast %0 : vector<8x1xf32> to vector<8x128xf32>
    %3 = arith.mulf %2, %1 : vector<8x128xf32>
    %c0_3 = arith.constant 0 : index
    %c0_4 = arith.constant 0 : index
    %4 = vector.load %arg3[%c0_3, %c0_4] : memref<8x1xf32, #tpu.memory_space<vmem>>, vector<8x1xf32>
    %5 = vector.broadcast %4 : vector<8x1xf32> to vector<8x128xf32>
    %6 = arith.addf %3, %5 : vector<8x128xf32>
    %cst = arith.constant 0.000000e+00 : f32
    %7 = vector.broadcast %cst : f32 to vector<8x128xf32>
    %8 = arith.maximumf %6, %7 : vector<8x128xf32>
    %c0_5 = arith.constant 0 : index
    %c0_6 = arith.constant 0 : index
    %9 = vector.load %arg4[%c0_5, %c0_6] : memref<8x128xf32, #tpu.memory_space<vmem>>, vector<8x128xf32>
    tpu.vector_store %arg4[%c0_5, %c0_6], %8 {strides = array<i32>} : memref<8x128xf32, #tpu.memory_space<vmem>>, vector<8x128xf32>,
    return
  }
  func.func @transform_0(%arg0: i32) -> (i32, i32) {
    %c0_i32 = arith.constant 0 : i32
    %c0_i32_0 = arith.constant 0 : i32
    return %c0_i32, %arg0 : i32, i32
  }
  func.func @transform_1(%arg0: i32) -> (i32, i32) {
    %c0_i32 = arith.constant 0 : i32
    %c0_i32_0 = arith.constant 0 : i32
    %c0_i32_1 = arith.constant 0 : i32
    return %c0_i32, %c0_i32_0 : i32, i32
  }
  func.func @transform_2(%arg0: i32) -> (i32, i32) {
    %c0_i32 = arith.constant 0 : i32
    %c0_i32_0 = arith.constant 0 : i32
    %c0_i32_1 = arith.constant 0 : i32
    return %c0_i32, %c0_i32_0 : i32, i32
  }
  func.func @transform_3(%arg0: i32) -> (i32, i32) {
    %c0_i32 = arith.constant 0 : i32
    %c0_i32_0 = arith.constant 0 : i32
    return %c0_i32, %arg0 : i32, i32
  }
}

module attributes {stable_mosaic.version = 11 : i64} {
  func.func @_bn_relu_conv2_stats_kernel(%arg0: i32, %arg1: memref<3x128xf32, #tpu.memory_space<vmem>>, %arg2: memref<8x128xf32, #tpu.memory_space<vmem>>, %arg3: memref<8x1xf32, #tpu.memory_space<vmem>>, %arg4: memref<8x1xf32, #tpu.memory_space<vmem>>, %arg5: memref<8x24xf32, #tpu.memory_space<vmem>>, %arg6: memref<8x128xf32, #tpu.memory_space<vmem>>, %arg7: memref<8x1xf32, #tpu.memory_space<vmem>>, %arg8: memref<8x1xf32, #tpu.memory_space<vmem>>) attributes {dimension_semantics = [#tpu.dimension_semantics<arbitrary>], iteration_bounds = array<i64: 1>, scalar_prefetch = 0 : i64, scratch_operands = 0 : i64, tpu.core_type = #tpu.core_type<tc>, window_params = [{transform_indices = @transform_0, window_bounds = array<i64: 3, 128>}, {transform_indices = @transform_1, window_bounds = array<i64: 8, 128>}, {pipeline_mode = #tpu.pipeline_mode<synchronous>, transform_indices = @transform_2, window_bounds = array<i64: 8, 1>}, {pipeline_mode = #tpu.pipeline_mode<synchronous>, transform_indices = @transform_3, window_bounds = array<i64: 8, 1>}, {pipeline_mode = #tpu.pipeline_mode<synchronous>, transform_indices = @transform_4, window_bounds = array<i64: 8, 24>}, {transform_indices = @transform_5, window_bounds = array<i64: 8, 128>}, {pipeline_mode = #tpu.pipeline_mode<synchronous>, transform_indices = @transform_6, window_bounds = array<i64: 8, 1>}, {pipeline_mode = #tpu.pipeline_mode<synchronous>, transform_indices = @transform_7, window_bounds = array<i64: 8, 1>}]} {
    %c0_i32 = arith.constant 0 : i32
    %0 = arith.cmpi eq, %arg0, %c0_i32 : i32
    %1 = arith.extui %0 : i1 to i32
    %c0_i32_0 = arith.constant 0 : i32
    %2 = arith.cmpi ne, %1, %c0_i32_0 : i32
    scf.if %2 {
      %cst_25 = arith.constant 0.000000e+00 : f32
      %38 = vector.broadcast %cst_25 : f32 to vector<8x1xf32>
      %c0_26 = arith.constant 0 : index
      %c0_27 = arith.constant 0 : index
      %39 = vector.load %arg7[%c0_26, %c0_27] : memref<8x1xf32, #tpu.memory_space<vmem>>, vector<8x1xf32>
      tpu.vector_store %arg7[%c0_26, %c0_27], %38 {strides = array<i32>} : memref<8x1xf32, #tpu.memory_space<vmem>>, vector<8x1xf32>,
      %cst_28 = arith.constant 0.000000e+00 : f32
      %40 = vector.broadcast %cst_28 : f32 to vector<8x1xf32>
      %c0_29 = arith.constant 0 : index
      %c0_30 = arith.constant 0 : index
      %41 = vector.load %arg8[%c0_29, %c0_30] : memref<8x1xf32, #tpu.memory_space<vmem>>, vector<8x1xf32>
      tpu.vector_store %arg8[%c0_29, %c0_30], %40 {strides = array<i32>} : memref<8x1xf32, #tpu.memory_space<vmem>>, vector<8x1xf32>,
    } else {
    }
    %c0 = arith.constant 0 : index
    %c0_1 = arith.constant 0 : index
    %3 = vector.load %arg1[%c0, %c0_1] : memref<3x128xf32, #tpu.memory_space<vmem>>, vector<1x128xf32>
    %c1 = arith.constant 1 : index
    %c0_2 = arith.constant 0 : index
    %4 = vector.load %arg1[%c1, %c0_2] : memref<3x128xf32, #tpu.memory_space<vmem>>, vector<1x128xf32>
    %c2 = arith.constant 2 : index
    %c0_3 = arith.constant 0 : index
    %5 = vector.load %arg1[%c2, %c0_3] : memref<3x128xf32, #tpu.memory_space<vmem>>, vector<1x128xf32>
    %c0_4 = arith.constant 0 : index
    %c0_5 = arith.constant 0 : index
    %6 = vector.load %arg3[%c0_4, %c0_5] : memref<8x1xf32, #tpu.memory_space<vmem>>, vector<8x1xf32>
    %c0_6 = arith.constant 0 : index
    %c0_7 = arith.constant 0 : index
    %7 = vector.load %arg2[%c0_6, %c0_7] : memref<8x128xf32, #tpu.memory_space<vmem>>, vector<8x128xf32>
    %8 = vector.broadcast %6 : vector<8x1xf32> to vector<8x128xf32>
    %9 = arith.mulf %8, %7 : vector<8x128xf32>
    %c0_8 = arith.constant 0 : index
    %c0_9 = arith.constant 0 : index
    %10 = vector.load %arg4[%c0_8, %c0_9] : memref<8x1xf32, #tpu.memory_space<vmem>>, vector<8x1xf32>
    %11 = vector.broadcast %10 : vector<8x1xf32> to vector<8x128xf32>
    %12 = arith.addf %9, %11 : vector<8x128xf32>
    %cst = arith.constant 0.000000e+00 : f32
    %13 = vector.broadcast %cst : f32 to vector<8x128xf32>
    %14 = arith.maximumf %12, %13 : vector<8x128xf32>
    %15 = vector.broadcast %5 : vector<1x128xf32> to vector<8x128xf32>
    %16 = arith.mulf %14, %15 : vector<8x128xf32>
    %c0_10 = arith.constant 0 : index
    %c0_11 = arith.constant 0 : index
    %17 = vector.load %arg5[%c0_10, %c0_11] : memref<8x24xf32, #tpu.memory_space<vmem>>, vector<8x24xf32>
    %c1_i32 = arith.constant 1 : i32
    %18 = tpu.dynamic_rotate %16 by %c1_i32 dim 1 : vector<8x128xf32>, i32 -> vector<8x128xf32>
    %19 = vector.broadcast %3 : vector<1x128xf32> to vector<8x128xf32>
    %20 = arith.mulf %18, %19 : vector<8x128xf32>
    %c127_i32 = arith.constant 127 : i32
    %21 = tpu.dynamic_rotate %16 by %c127_i32 dim 1 : vector<8x128xf32>, i32 -> vector<8x128xf32>
    %22 = vector.broadcast %4 : vector<1x128xf32> to vector<8x128xf32>
    %23 = arith.mulf %21, %22 : vector<8x128xf32>
    %24 = tpu.concatenate %20, %16, %23 in 0 : vector<8x128xf32>, vector<8x128xf32>, vector<8x128xf32> -> vector<24x128xf32>
    %cst_12 = arith.constant dense<0.000000e+00> : vector<8x128xf32>
    %25 = tpu.matmul %17, %24, %cst_12 {dimension_numbers = #tpu.dot_dimension_numbers<[1], [0], [0], [1], [0, 0, 1, 1], [], []>} : vector<8x24xf32>, vector<24x128xf32>, vector<8x128xf32> -> vector<8x128xf32>
    %c0_13 = arith.constant 0 : index
    %c0_14 = arith.constant 0 : index
    %26 = vector.load %arg6[%c0_13, %c0_14] : memref<8x128xf32, #tpu.memory_space<vmem>>, vector<8x128xf32>
    tpu.vector_store %arg6[%c0_13, %c0_14], %25 {strides = array<i32>} : memref<8x128xf32, #tpu.memory_space<vmem>>, vector<8x128xf32>,
    %c0_15 = arith.constant 0 : index
    %c0_16 = arith.constant 0 : index
    %27 = vector.load %arg7[%c0_15, %c0_16] : memref<8x1xf32, #tpu.memory_space<vmem>>, vector<8x1xf32>
    %cst_17 = arith.constant dense<0.000000e+00> : vector<8xf32>
    %28 = vector.multi_reduction <add>, %25, %cst_17 [1] : vector<8x128xf32> to vector<8xf32>
    %29 = vector.shape_cast %28 : vector<8xf32> to vector<8x1xf32>
    %30 = arith.addf %27, %29 : vector<8x1xf32>
    %c0_18 = arith.constant 0 : index
    %c0_19 = arith.constant 0 : index
    %31 = vector.load %arg7[%c0_18, %c0_19] : memref<8x1xf32, #tpu.memory_space<vmem>>, vector<8x1xf32>
    tpu.vector_store %arg7[%c0_18, %c0_19], %30 {strides = array<i32>} : memref<8x1xf32, #tpu.memory_space<vmem>>, vector<8x1xf32>,
    %c0_20 = arith.constant 0 : index
    %c0_21 = arith.constant 0 : index
    %32 = vector.load %arg8[%c0_20, %c0_21] : memref<8x1xf32, #tpu.memory_space<vmem>>, vector<8x1xf32>
    %33 = arith.mulf %25, %25 : vector<8x128xf32>
    %cst_22 = arith.constant dense<0.000000e+00> : vector<8xf32>
    %34 = vector.multi_reduction <add>, %33, %cst_22 [1] : vector<8x128xf32> to vector<8xf32>
    %35 = vector.shape_cast %34 : vector<8xf32> to vector<8x1xf32>
    %36 = arith.addf %32, %35 : vector<8x1xf32>
    %c0_23 = arith.constant 0 : index
    %c0_24 = arith.constant 0 : index
    %37 = vector.load %arg8[%c0_23, %c0_24] : memref<8x1xf32, #tpu.memory_space<vmem>>, vector<8x1xf32>
    tpu.vector_store %arg8[%c0_23, %c0_24], %36 {strides = array<i32>} : memref<8x1xf32, #tpu.memory_space<vmem>>, vector<8x1xf32>,
    return
  }
  func.func @transform_0(%arg0: i32) -> (i32, i32) {
    %c0_i32 = arith.constant 0 : i32
    %c0_i32_0 = arith.constant 0 : i32
    return %c0_i32, %arg0 : i32, i32
  }
  func.func @transform_1(%arg0: i32) -> (i32, i32) {
    %c0_i32 = arith.constant 0 : i32
    %c0_i32_0 = arith.constant 0 : i32
    return %c0_i32, %arg0 : i32, i32
  }
  func.func @transform_2(%arg0: i32) -> (i32, i32) {
    %c0_i32 = arith.constant 0 : i32
    %c0_i32_0 = arith.constant 0 : i32
    %c0_i32_1 = arith.constant 0 : i32
    return %c0_i32, %c0_i32_0 : i32, i32
  }
  func.func @transform_3(%arg0: i32) -> (i32, i32) {
    %c0_i32 = arith.constant 0 : i32
    %c0_i32_0 = arith.constant 0 : i32
    %c0_i32_1 = arith.constant 0 : i32
    return %c0_i32, %c0_i32_0 : i32, i32
  }
  func.func @transform_4(%arg0: i32) -> (i32, i32) {
    %c0_i32 = arith.constant 0 : i32
    %c0_i32_0 = arith.constant 0 : i32
    %c0_i32_1 = arith.constant 0 : i32
    return %c0_i32, %c0_i32_0 : i32, i32
  }
  func.func @transform_5(%arg0: i32) -> (i32, i32) {
    %c0_i32 = arith.constant 0 : i32
    %c0_i32_0 = arith.constant 0 : i32
    return %c0_i32, %arg0 : i32, i32
  }
  func.func @transform_6(%arg0: i32) -> (i32, i32) {
    %c0_i32 = arith.constant 0 : i32
    %c0_i32_0 = arith.constant 0 : i32
    %c0_i32_1 = arith.constant 0 : i32
    return %c0_i32, %c0_i32_0 : i32, i32
  }
  func.func @transform_7(%arg0: i32) -> (i32, i32) {
    %c0_i32 = arith.constant 0 : i32
    %c0_i32_0 = arith.constant 0 : i32
    %c0_i32_1 = arith.constant 0 : i32
    return %c0_i32, %c0_i32_0 : i32, i32
  }
}

</mosaic_0001>

<bundles_post_ra>
// kernel: inconv_forward.4
= control target key start
LH: loop header
LB: loop body
LE: loop exit
PB: predicated region body
PF: predicated region fallthrough
CT: control target
= control target key end

     0   :  { %v118_v0 = vmov 0   ;;  %s120_s9 = smov 1   ;;  %vm60_vm0 = vcmask 195584   ;;  %vm27_vm1 = vcmask 7168   ;;  %v121_v18 = vmov 0.0   ;;  %s208_s2 = inlined_call_operand.vmem [shape: f32[8,1], index: 2, kind: input, shape index: {}]   ;;  %s209_s0 = inlined_call_operand.vmem [shape: f32[3,128], index: 0, kind: input, shape index: {}]   ;;  %s210_s3 = inlined_call_operand.vmem [shape: f32[8,1], index: 3, kind: input, shape index: {}]   ;;  %s211_s1 = inlined_call_operand.vmem [shape: f32[8,128], index: 1, kind: input, shape index: {}]   ;;  %s212_s4 = inlined_call_operand.vmem [shape: f32[8,24], index: 4, kind: input, shape index: {}]   ;;  %s213_s6 = inlined_call_operand.vmem [shape: f32[8,1], index: 6, kind: output, shape index: {1}]   ;;  %s214_s7 = inlined_call_operand.vmem [shape: f32[8,1], index: 7, kind: output, shape index: {2}]   ;;  %s215_s5 = inlined_call_operand.vmem [shape: f32[8,128], index: 5, kind: output, shape index: {0}]  }
   0x1   :  { %114 = vset.pattern.permute.xlu0 %v118_v0  ;;  %v33_v1 = vld [vmem:[%s208_s2] sm:$0xff]  ;;  %s119_s2 = smov 127   ;;  %28 = vst.msk [vmem:[%s213_s6] sm:$0xff] %vm27_vm1, %v121_v18 }
   0x2   :  { %37 = vperm.xlu0 %114, %v33_v1   ;;  %v41_v2 = vld [vmem:[%s210_s3] sm:$0xff]  ;;  %29 = vst.msk [vmem:[%s214_s7] sm:$0xff] %vm27_vm1, %v121_v18 }
   0x3   :  { %v34_v4 = vld [vmem:[%s211_s1] sm:$0xff] }
   0x4   :  { %v115_v8 = vld [vmem:[%s209_s0 + $0x2] ss:$0 sm:$0xff]  ;;  %v116_v11 = vld [vmem:[%s209_s0 + $0x1] ss:$0 sm:$0xff]  ;;  %v117_v14 = vld [vmem:[%s209_s0] ss:$0 sm:$0xff] }
   0x5   :  { %v51_v17 = vld [vmem:[%s212_s4] sm:$0xff] }
   0x8   :  { %v85_v21 = vld [vmem:[%s213_s6] sm:$0xff] }
   0x9   :  { %v91_v24 = vld [vmem:[%s214_s7] sm:$0xff] }
   0xa   :  { %44 = vperm.xlu0 %114, %v41_v2  }
  0x74   :  { %v38_v3 = vpop.permute.xlu0 %37 }
  0x75   :  { %v40_v5 = vmul.f32 %v38_v3, %v34_v4 }
  0x7c   :  { %v45_v6 = vpop.permute.xlu0 %44 }
  0x7d   :  { %v47_v7 = vadd.f32 %v45_v6, %v40_v5 }
  0x7f   :  { %v48_v9 = vmax.f32 %v47_v7, 0.0 }
  0x81   :  { %v50_v10 = vmul.f32 %v115_v8, %v48_v9 }
  0x83   :  { %56 = vrot.lane.b32.xlu1 %v50_v10, %s119_s2 }
  0x8b   :  { %52 = vrot.lane.b32.xlu1 %v50_v10, %s120_s9 }
  0xf5   :  { %v57_v12 = vpop.permute.xlu1 %56 }
  0xf6   :  { %v59_v13 = vmul.f32 %v116_v11, %v57_v12 }
  0xf8   :  { %77 = vmatpush.msra.mxu0 %v59_v13 }
  0xfa   :  { %78 = vmatpush.msra.mxu0 %v50_v10 }
  0xfd   :  { %v53_v15 = vpop.permute.xlu1 %52 }
  0xfe   :  { %v55_v16 = vmul.f32 %v117_v14, %v53_v15 }
 0x100   :  { %79 = vmatpush.msra.mxu0 %v55_v16 }
 0x101   :  { %109 = vmatmul.msk.f32.vlgmr.msra.gmra.mxu0 %vm60_vm0, %v51_v17 }
 0x17e   :  { %v81_v19 = vpop.f32.mrf.mxu0 }
 0x17f   :  { %84 = vst [vmem:[%s215_s5] sm:$0xff] %v81_v19  ;;  %86 = vadd.xlane.f32.xlu2 %v81_v19  ;;  %v92_v20 = vmul.f32 %v81_v19, %v81_v19 }
 0x187   :  { %93 = vadd.xlane.f32.xlu2 %v92_v20 }
 0x1f2   :  { %v87_v22 = vpop.xlane.xlu2 %86 }
 0x1f3   :  { %v88_v23 = vadd.f32 %v87_v22, %v85_v21 }
 0x1f5   :  { %90 = vst.msk [vmem:[%s213_s6] sm:$0xff] %vm27_vm1, %v88_v23 }
 0x1fa   :  { %v94_v25 = vpop.xlane.xlu2 %93 }
 0x1fb   :  { %v95_v26 = vadd.f32 %v94_v25, %v91_v24 }
 0x1fd   :  { %96 = vst.msk [vmem:[%s214_s7] sm:$0xff] %vm27_vm1, %v95_v26 }

// kernel: inconv_forward.5
= control target key start
LH: loop header
LB: loop body
LE: loop exit
PB: predicated region body
PF: predicated region fallthrough
CT: control target
= control target key end

     0   :  { %v37_v0 = vmov 0   ;;  %s70_s1 = inlined_call_operand.vmem [shape: f32[8,1], index: 1, kind: input, shape index: {}]   ;;  %s71_s2 = inlined_call_operand.vmem [shape: f32[8,1], index: 2, kind: input, shape index: {}]   ;;  %s72_s0 = inlined_call_operand.vmem [shape: f32[8,128], index: 0, kind: input, shape index: {}]   ;;  %s73_s3 = inlined_call_operand.vmem [shape: f32[8,128], index: 3, kind: output, shape index: {}]  }
   0x1   :  { %36 = vset.pattern.permute.xlu0 %v37_v0  ;;  %v14_v1 = vld [vmem:[%s70_s1] sm:$0xff] }
   0x2   :  { %18 = vperm.xlu0 %36, %v14_v1   ;;  %v22_v2 = vld [vmem:[%s71_s2] sm:$0xff] }
   0x3   :  { %v15_v4 = vld [vmem:[%s72_s0] sm:$0xff] }
   0xa   :  { %25 = vperm.xlu0 %36, %v22_v2  }
  0x74   :  { %v19_v3 = vpop.permute.xlu0 %18 }
  0x75   :  { %v21_v5 = vmul.f32 %v19_v3, %v15_v4 }
  0x7c   :  { %v26_v6 = vpop.permute.xlu0 %25 }
  0x7d   :  { %v28_v7 = vadd.f32 %v26_v6, %v21_v5 }
  0x7f   :  { %v29_v8 = vmax.f32 %v28_v7, 0.0 }
  0x81   :  { %30 = vst [vmem:[%s73_s3] sm:$0xff] %v29_v8 }

// kernel: inconv_forward.3
= control target key start
LH: loop header
LB: loop body
LE: loop exit
PB: predicated region body
PF: predicated region fallthrough
CT: control target
= control target key end

     0   :  { %s91_s20 = smov 127   ;;  %s92_s21 = smov 1   ;;  %vm36_vm0 = vcmask 195584   ;;  %vm21_vm1 = vcmask 7168   ;;  %v93_v8 = vmov 0.0   ;;  %s161_s1 = inlined_call_operand.vmem [shape: f32[8,128], index: 1, kind: input, shape index: {}]   ;;  %s162_s0 = inlined_call_operand.vmem [shape: f32[3,128], index: 0, kind: input, shape index: {}]   ;;  %s163_s2 = inlined_call_operand.vmem [shape: f32[8,24], index: 2, kind: input, shape index: {}]   ;;  %s164_s4 = inlined_call_operand.vmem [shape: f32[8,1], index: 4, kind: output, shape index: {1}]   ;;  %s165_s5 = inlined_call_operand.vmem [shape: f32[8,1], index: 5, kind: output, shape index: {2}]   ;;  %s166_s3 = inlined_call_operand.vmem [shape: f32[8,128], index: 3, kind: output, shape index: {0}]  }
   0x1   :  { %v26_v0 = vld [vmem:[%s161_s1] sm:$0xff]  ;;  %22 = vst.msk [vmem:[%s164_s4] sm:$0xff] %vm21_vm1, %v93_v8 }
   0x2   :  { %32 = vrot.lane.b32.xlu0 %v26_v0, %s91_s20  ;;  %v89_v1 = vld [vmem:[%s162_s0 + $0x1] ss:$0 sm:$0xff]  ;;  %v90_v4 = vld [vmem:[%s162_s0] ss:$0 sm:$0xff]  ;;  %23 = vst.msk [vmem:[%s165_s5] sm:$0xff] %vm21_vm1, %v93_v8 }
   0x3   :  { %v27_v7 = vld [vmem:[%s163_s2] sm:$0xff] }
   0x8   :  { %v61_v11 = vld [vmem:[%s164_s4] sm:$0xff] }
   0x9   :  { %v67_v14 = vld [vmem:[%s165_s5] sm:$0xff] }
   0xa   :  { %28 = vrot.lane.b32.xlu0 %v26_v0, %s92_s21 }
  0x74   :  { %v33_v2 = vpop.permute.xlu0 %32 }
  0x75   :  { %v35_v3 = vmul.f32 %v89_v1, %v33_v2 }
  0x77   :  { %53 = vmatpush.msra.mxu0 %v35_v3 }
  0x79   :  { %54 = vmatpush.msra.mxu0 %v26_v0 }
  0x7c   :  { %v29_v5 = vpop.permute.xlu0 %28 }
  0x7d   :  { %v31_v6 = vmul.f32 %v90_v4, %v29_v5 }
  0x7f   :  { %55 = vmatpush.msra.mxu0 %v31_v6 }
  0x80   :  { %85 = vmatmul.msk.f32.vlgmr.msra.gmra.mxu0 %vm36_vm0, %v27_v7 }
  0xfd   :  { %v57_v9 = vpop.f32.mrf.mxu0 }
  0xfe   :  { %60 = vst [vmem:[%s166_s3] sm:$0xff] %v57_v9  ;;  %62 = vadd.xlane.f32.xlu1 %v57_v9  ;;  %v68_v10 = vmul.f32 %v57_v9, %v57_v9 }
 0x106   :  { %69 = vadd.xlane.f32.xlu1 %v68_v10 }
 0x171   :  { %v63_v12 = vpop.xlane.xlu1 %62 }
 0x172   :  { %v64_v13 = vadd.f32 %v63_v12, %v61_v11 }
 0x174   :  { %66 = vst.msk [vmem:[%s164_s4] sm:$0xff] %vm21_vm1, %v64_v13 }
 0x179   :  { %v70_v15 = vpop.xlane.xlu1 %69 }
 0x17a   :  { %v71_v16 = vadd.f32 %v70_v15, %v67_v14 }
 0x17c   :  { %72 = vst.msk [vmem:[%s165_s5] sm:$0xff] %vm21_vm1, %v71_v16 }

</bundles_post_ra>
